<compile_context>
chip_gen: v7x
topology: tpu7x:2x2x1
jax: 0.10.0
libtpu: 0.0.40
codegen_flags: <defaults>
</compile_context>

<pallas_src>
import functools

import jax
import jax.numpy as jnp
from jax import lax
from jax.experimental import pallas as pl
from jax.experimental.pallas import tpu as pltpu


# -----------------------------------------------------------------------------
# Kernel 1: banded sliding-window self-attention (flash-style online softmax).
# grid = (B, num_q_tiles, num_local_kv_tiles); the kv axis is a reduction ("arbitrary").
# -----------------------------------------------------------------------------
def _banded_attn_kernel(xq_ref, xkv_ref, o_ref, m_ref, l_ref, acc_ref,
                        *, nhead, dh, window, tile, n_kv_tiles, nnb):
    qi = pl.program_id(1)
    j = pl.program_id(2)

    @pl.when(j == 0)
    def _():
        m_ref[...] = jnp.full_like(m_ref, -1e30)
        l_ref[...] = jnp.zeros_like(l_ref)
        acc_ref[...] = jnp.zeros_like(acc_ref)

    # Unclamped global kv-tile index for this local step; skip tiles past the sequence edge.
    g = qi + (j - nnb)
    valid = jnp.logical_and(g >= 0, g < n_kv_tiles)

    @pl.when(valid)
    def _():
        q_start = qi * tile
        k_start = g * tile
        row = lax.broadcasted_iota(jnp.int32, (tile, tile), 0) + q_start
        col = lax.broadcasted_iota(jnp.int32, (tile, tile), 1) + k_start
        in_win = jnp.abs(row - col) <= window

        xq = xq_ref[0]                       # (tile, D)
        xkv = xkv_ref[0]                     # (tile, D)   (serves as both K and V)
        for h in range(nhead):
            lo, hi = h * dh, (h + 1) * dh
            q = xq[:, lo:hi]
            kv = xkv[:, lo:hi]
            # Contract last dims directly (no explicit K transpose through the XLU).
            s = lax.dot_general(q, kv, (((1,), (1,)), ((), ())),
                                preferred_element_type=jnp.float32)
            s = jnp.where(in_win, s, -1e30)
            m_prev = m_ref[h]                                        # (tile, 1)
            m_new = jnp.maximum(m_prev, jnp.max(s, axis=-1, keepdims=True))
            alpha = jnp.exp(m_prev - m_new)
            # Zero masked probabilities explicitly (handles rows fully masked in this tile).
            p = jnp.where(in_win, jnp.exp(s - m_new), 0.0)           # (tile, tile)
            l_ref[h] = alpha * l_ref[h] + jnp.sum(p, axis=-1, keepdims=True)
            acc_ref[h] = alpha * acc_ref[h] + jnp.dot(
                p.astype(kv.dtype), kv, preferred_element_type=jnp.float32)
            m_ref[h] = m_new

    @pl.when(j == pl.num_programs(2) - 1)
    def _():
        # Finalize: one lane-dense (tile, D) store.
        outs = []
        for h in range(nhead):
            inv_l = pl.reciprocal(l_ref[h], approx=True)             # EUP slot
            outs.append(acc_ref[h] * inv_l)
        o_ref[0] = jnp.concatenate(outs, axis=-1).astype(o_ref.dtype)


def sliding_attention(x, *, nhead, window):
    """x: (B, L, D) -> (B, L, D) sliding-window multi-head self-attention (no projections)."""
    B, L, D = x.shape
    assert D % nhead == 0
    dh = D // nhead
    tile = L if L <= 128 else 128
    assert L % tile == 0, "sequence length must tile evenly"
    n_tiles = L // tile
    nnb = -(-window // tile)                  # ceil(window / tile): neighbor tiles per side
    n_local = 2 * nnb + 1

    q_spec = pl.BlockSpec((1, tile, D), lambda b, qi, j: (b, qi, 0))
    kv_spec = pl.BlockSpec(
        (1, tile, D),
        lambda b, qi, j: (b, jnp.clip(qi + (j - nnb), 0, n_tiles - 1), 0))
    out_spec = pl.BlockSpec((1, tile, D), lambda b, qi, j: (b, qi, 0))

    kernel = functools.partial(
        _banded_attn_kernel, nhead=nhead, dh=dh, window=window,
        tile=tile, n_kv_tiles=n_tiles, nnb=nnb)

    return pl.pallas_call(
        kernel,
        out_shape=jax.ShapeDtypeStruct((B, L, D), x.dtype),
        grid=(B, n_tiles, n_local),
        in_specs=[q_spec, kv_spec],
        out_specs=out_spec,
        scratch_shapes=[
            pltpu.VMEM((nhead, tile, 1), jnp.float32),    # running max
            pltpu.VMEM((nhead, tile, 1), jnp.float32),    # running sum
            pltpu.VMEM((nhead, tile, dh), jnp.float32),   # running output accumulator
        ],
        compiler_params=pltpu.CompilerParams(
            dimension_semantics=("parallel", "parallel", "arbitrary")),
    )(x, x)   # one activation passed twice: q-role (tile qi) and kv-role (tile g)


# -----------------------------------------------------------------------------
# Kernel 2: fused residual + LayerNorm1 + FFN (Linear/ReLU/Linear) + residual + LayerNorm2.
# grid = (B, L // TL); one sequence tile per step, constant-index weight blocks.
# -----------------------------------------------------------------------------
def _layer_tail_kernel(src_ref, attn_ref, g1_ref, b1_ref, w1_ref, bb1_ref,
                       w2_ref, bb2_ref, g2_ref, b2_ref, out_ref):
    eps = 1e-5
    x = src_ref[0].astype(jnp.float32) + attn_ref[0].astype(jnp.float32)     # (TL, D)

    mu = jnp.mean(x, axis=-1, keepdims=True)
    var = jnp.mean(jnp.square(x - mu), axis=-1, keepdims=True)
    x1 = (x - mu) * lax.rsqrt(var + eps) * g1_ref[...] + b1_ref[...]         # (TL, D)

    h = jnp.dot(x1.astype(w1_ref.dtype), w1_ref[...],
                preferred_element_type=jnp.float32) + bb1_ref[...]
    h = jnp.maximum(h, 0.0)                                                  # ReLU
    ff = jnp.dot(h.astype(w2_ref.dtype), w2_ref[...],
                 preferred_element_type=jnp.float32) + bb2_ref[...]

    y = x1 + ff
    mu2 = jnp.mean(y, axis=-1, keepdims=True)
    var2 = jnp.mean(jnp.square(y - mu2), axis=-1, keepdims=True)
    out_ref[0] = ((y - mu2) * lax.rsqrt(var2 + eps) * g2_ref[...]
                  + b2_ref[...]).astype(out_ref.dtype)


def layer_tail(src, attn, layer_params):
    B, L, D = src.shape
    w1 = layer_params["w1"].T              # (D, F)
    w2 = layer_params["w2"].T              # (F, D)
    F = w1.shape[1]
    g1 = layer_params["ln1_g"].reshape(1, D)
    b1 = layer_params["ln1_b"].reshape(1, D)
    g2 = layer_params["ln2_g"].reshape(1, D)
    b2 = layer_params["ln2_b"].reshape(1, D)
    bb1 = layer_params["bb1"].reshape(1, F)
    bb2 = layer_params["bb2"].reshape(1, D)

    tl = L if L <= 128 else 128
    assert L % tl == 0
    n_tiles = L // tl

    row_spec = pl.BlockSpec((1, tl, D), lambda b, t: (b, t, 0))
    const2d = lambda shape: pl.BlockSpec(shape, lambda b, t: (0, 0))

    return pl.pallas_call(
        _layer_tail_kernel,
        out_shape=jax.ShapeDtypeStruct((B, L, D), src.dtype),
        grid=(B, n_tiles),
        in_specs=[
            row_spec,                            # src tile
            row_spec,                            # attention-output tile
            const2d((1, D)), const2d((1, D)),    # ln1 gamma, beta
            const2d((D, F)), const2d((1, F)),    # w1, b1
            const2d((F, D)), const2d((1, D)),    # w2, b2
            const2d((1, D)), const2d((1, D)),    # ln2 gamma, beta
        ],
        out_specs=row_spec,
        compiler_params=pltpu.CompilerParams(
            dimension_semantics=("parallel", "parallel")),
    )(src, attn, g1, b1, w1, bb1, w2, bb2, g2, b2)


# -----------------------------------------------------------------------------
# Kernel 3: vocab-tiled decoder Linear + log_softmax.
# Stage 1: grid = (B, L//TL, V//TV); logits tiles + online logsumexp accumulator.
# Stage 2: grid = (B, L//TL, V//TV); subtract the logsumexp (log_softmax), all parallel.
# -----------------------------------------------------------------------------
def _decoder_logits_kernel(x_ref, w_ref, bias_ref, logits_ref, lse_ref, m_ref, s_ref):
    vi = pl.program_id(2)

    @pl.when(vi == 0)
    def _():
        m_ref[...] = jnp.full_like(m_ref, -1e30)
        s_ref[...] = jnp.zeros_like(s_ref)

    x = x_ref[0]
    logits = jnp.dot(x.astype(w_ref.dtype), w_ref[...],
                     preferred_element_type=jnp.float32) + bias_ref[...]     # (TL, TV)
    logits_ref[0] = logits

    m_prev = m_ref[...]
    m_new = jnp.maximum(m_prev, jnp.max(logits, axis=-1, keepdims=True))
    s_ref[...] = (s_ref[...] * jnp.exp(m_prev - m_new)
                  + jnp.sum(jnp.exp(logits - m_new), axis=-1, keepdims=True))
    m_ref[...] = m_new

    @pl.when(vi == pl.num_programs(2) - 1)
    def _():
        lse_ref[0] = m_ref[...] + jnp.log(s_ref[...])


def _lognorm_kernel(logits_ref, lse_ref, out_ref):
    out_ref[0] = (logits_ref[0] - lse_ref[0]).astype(out_ref.dtype)


def _pick_vocab_tile(v, max_tile=2048, align=128):
    if v <= max_tile:
        return v
    t = (max_tile // align) * align
    while t >= align:
        if v % t == 0:
            return t
        t -= align
    return v   # fall back to full vocab (last resort)


def decoder_log_softmax(x, dec_w, dec_b):
    B, L, D = x.shape
    V = dec_w.shape[0]
    w = dec_w.T                   # (D, V)
    bias = dec_b.reshape(1, V)

    tl = L if L <= 128 else 128
    assert L % tl == 0
    n_l = L // tl
    tv = _pick_vocab_tile(V)
    n_v = V // tv

    logits, lse = pl.pallas_call(
        _decoder_logits_kernel,
        out_shape=(jax.ShapeDtypeStruct((B, L, V), jnp.float32),
                   jax.ShapeDtypeStruct((B, L, 1), jnp.float32)),
        grid=(B, n_l, n_v),
        in_specs=[
            pl.BlockSpec((1, tl, D), lambda b, li, vi: (b, li, 0)),
            pl.BlockSpec((D, tv), lambda b, li, vi: (0, vi)),
            pl.BlockSpec((1, tv), lambda b, li, vi: (0, vi)),
        ],
        out_specs=(
            pl.BlockSpec((1, tl, tv), lambda b, li, vi: (b, li, vi)),
            pl.BlockSpec((1, tl, 1), lambda b, li, vi: (b, li, 0)),
        ),
        scratch_shapes=[pltpu.VMEM((tl, 1), jnp.float32),
                        pltpu.VMEM((tl, 1), jnp.float32)],
        compiler_params=pltpu.CompilerParams(
            dimension_semantics=("parallel", "parallel", "arbitrary")),
    )(x, w, bias)

    return pl.pallas_call(
        _lognorm_kernel,
        out_shape=jax.ShapeDtypeStruct((B, L, V), jnp.float32),
        grid=(B, n_l, n_v),
        in_specs=[
            pl.BlockSpec((1, tl, tv), lambda b, li, vi: (b, li, vi)),
            pl.BlockSpec((1, tl, 1), lambda b, li, vi: (b, li, 0)),
        ],
        out_specs=pl.BlockSpec((1, tl, tv), lambda b, li, vi: (b, li, vi)),
        compiler_params=pltpu.CompilerParams(
            dimension_semantics=("parallel", "parallel", "parallel")),
    )(logits, lse)


# -----------------------------------------------------------------------------
# Parameter init (deterministic, mirrors shapes of the PyTorch module __init__).
# -----------------------------------------------------------------------------
def init_params(key, ntoken, hidden, nlayers, ff_dim):
    initrange = 0.1
    keys = jax.random.split(key, 2 + nlayers)
    params = {
        "embedding": jax.random.uniform(keys[0], (ntoken, hidden), jnp.float32,
                                        -initrange, initrange),
        "dec_w": jax.random.uniform(keys[1], (ntoken, hidden), jnp.float32,
                                    -initrange, initrange),
        "dec_b": jnp.zeros((ntoken,), jnp.float32),
        "layers": [],
    }
    for l in range(nlayers):
        k = jax.random.split(keys[2 + l], 4)
        bnd1 = 1.0 / (hidden ** 0.5)
        bnd2 = 1.0 / (ff_dim ** 0.5)
        params["layers"].append(dict(
            ln1_g=jnp.ones((hidden,), jnp.float32),
            ln1_b=jnp.zeros((hidden,), jnp.float32),
            ln2_g=jnp.ones((hidden,), jnp.float32),
            ln2_b=jnp.zeros((hidden,), jnp.float32),
            w1=jax.random.uniform(k[0], (ff_dim, hidden), jnp.float32, -bnd1, bnd1),
            bb1=jax.random.uniform(k[1], (ff_dim,), jnp.float32, -bnd1, bnd1),
            w2=jax.random.uniform(k[2], (hidden, ff_dim), jnp.float32, -bnd2, bnd2),
            bb2=jax.random.uniform(k[3], (ff_dim,) if False else (hidden,),
                                   jnp.float32, -bnd2, bnd2),
        ))
    return params


# -----------------------------------------------------------------------------
# Full forward pass (embedding gather is XLA glue; everything else is Pallas).
# -----------------------------------------------------------------------------
def transformer_forward(params, tokens, *, nhead, attention_window):
    B, L = tokens.shape
    if L % (attention_window * 2) != 0:
        raise ValueError("Sequence length must be a multiple of attention window size")
    x = params["embedding"][tokens]          # (B, L, D) embedding gather (glue)
    # dropout -> identity (eval mode)
    for layer in params["layers"]:
        attn = sliding_attention(x, nhead=nhead, window=attention_window)   # (B, L, D)
        x = layer_tail(x, attn, layer)                                       # fused LN/FFN/LN
    return decoder_log_softmax(x, params["dec_w"], params["dec_b"])          # (B, L, ntoken) f32


if __name__ == "__main__":
    ntoken = 50
    hidden = 32
    nhead = 4
    nlayers = 2
    attention_window = 2
    feedforward_dim = 64
    batch = 2
    seq = 8          # multiple of attention_window * 2

    key = jax.random.PRNGKey(0)
    pkey, tkey = jax.random.split(key)
    params = init_params(pkey, ntoken, hidden, nlayers, feedforward_dim)
    tokens = jax.random.randint(tkey, (batch, seq), 0, ntoken, dtype=jnp.int32)

    out = transformer_forward(params, tokens, nhead=nhead,
                              attention_window=attention_window)
    out = jax.block_until_ready(out)

    assert out.shape == (batch, seq, ntoken)
    # log_softmax sanity: probabilities sum to 1 along the vocab axis.
    probs_sum = jnp.sum(jnp.exp(out), axis=-1)
    assert bool(jnp.all(jnp.abs(probs_sum - 1.0) < 1e-3))
    assert bool(jnp.all(jnp.isfinite(out)))
    print("KERNEL_OK")
</pallas_src>

<mosaic_0001>
module attributes {stable_mosaic.version = 11 : i64} {
  func.func @_banded_attn_kernel(%arg0: i32, %arg1: i32, %arg2: i32, %arg3: memref<1x8x32xf32, #tpu.memory_space<vmem>>, %arg4: memref<1x8x32xf32, #tpu.memory_space<vmem>>, %arg5: memref<1x8x32xf32, #tpu.memory_space<vmem>>, %arg6: memref<4x8x1xf32, #tpu.memory_space<vmem>>, %arg7: memref<4x8x1xf32, #tpu.memory_space<vmem>>, %arg8: memref<4x8x8xf32, #tpu.memory_space<vmem>>) attributes {dimension_semantics = [#tpu.dimension_semantics<parallel>, #tpu.dimension_semantics<parallel>, #tpu.dimension_semantics<arbitrary>], iteration_bounds = array<i64: 2, 1, 3>, scalar_prefetch = 0 : i64, scratch_operands = 3 : i64, tpu.core_type = #tpu.core_type<tc>, window_params = [{transform_indices = @transform_0, window_bounds = array<i64: 1, 8, 32>}, {transform_indices = @transform_1, window_bounds = array<i64: 1, 8, 32>}, {transform_indices = @transform_2, window_bounds = array<i64: 1, 8, 32>}]} {
    %c0_i32 = arith.constant 0 : i32
    %0 = arith.cmpi eq, %arg2, %c0_i32 : i32
    %1 = arith.extui %0 : i1 to i32
    %c0_i32_0 = arith.constant 0 : i32
    %2 = arith.cmpi ne, %1, %c0_i32_0 : i32
    scf.if %2 {
      %cst = arith.constant -1.000000e+30 : f32
      %13 = vector.broadcast %cst : f32 to vector<4x8x1xf32>
      %c0 = arith.constant 0 : index
      %c0_5 = arith.constant 0 : index
      %c0_6 = arith.constant 0 : index
      %14 = vector.load %arg6[%c0, %c0_5, %c0_6] : memref<4x8x1xf32, #tpu.memory_space<vmem>>, vector<4x8x1xf32>
      tpu.vector_store %arg6[%c0, %c0_5, %c0_6], %13 {strides = array<i32>} : memref<4x8x1xf32, #tpu.memory_space<vmem>>, vector<4x8x1xf32>,
      %cst_7 = arith.constant 0.000000e+00 : f32
      %15 = vector.broadcast %cst_7 : f32 to vector<4x8x1xf32>
      %c0_8 = arith.constant 0 : index
      %c0_9 = arith.constant 0 : index
      %c0_10 = arith.constant 0 : index
      %16 = vector.load %arg7[%c0_8, %c0_9, %c0_10] : memref<4x8x1xf32, #tpu.memory_space<vmem>>, vector<4x8x1xf32>
      tpu.vector_store %arg7[%c0_8, %c0_9, %c0_10], %15 {strides = array<i32>} : memref<4x8x1xf32, #tpu.memory_space<vmem>>, vector<4x8x1xf32>,
      %cst_11 = arith.constant 0.000000e+00 : f32
      %17 = vector.broadcast %cst_11 : f32 to vector<4x8x8xf32>
      %c0_12 = arith.constant 0 : index
      %c0_13 = arith.constant 0 : index
      %c0_14 = arith.constant 0 : index
      %18 = vector.load %arg8[%c0_12, %c0_13, %c0_14] : memref<4x8x8xf32, #tpu.memory_space<vmem>>, vector<4x8x8xf32>
      tpu.vector_store %arg8[%c0_12, %c0_13, %c0_14], %17 {strides = array<i32>} : memref<4x8x8xf32, #tpu.memory_space<vmem>>, vector<4x8x8xf32>,
    } else {
    }
    %c1_i32 = arith.constant 1 : i32
    %3 = arith.subi %arg2, %c1_i32 : i32
    %4 = arith.addi %arg1, %3 : i32
    %c0_i32_1 = arith.constant 0 : i32
    %5 = arith.cmpi sge, %4, %c0_i32_1 : i32
    %c1_i32_2 = arith.constant 1 : i32
    %6 = arith.cmpi slt, %4, %c1_i32_2 : i32
    %7 = arith.andi %5, %6 : i1
    %8 = arith.extui %7 : i1 to i32
    %c0_i32_3 = arith.constant 0 : i32
    %9 = arith.cmpi ne, %8, %c0_i32_3 : i32
    scf.if %9 {
      %c8_i32 = arith.constant 8 : i32
      %13 = arith.muli %arg1, %c8_i32 : i32
      %c8_i32_5 = arith.constant 8 : i32
      %14 = arith.muli %4, %c8_i32_5 : i32
      %15 = tpu.iota {dimensions = array<i32: 0>} : vector<8x8xi32>
      %16 = vector.broadcast %13 : i32 to vector<8x8xi32>
      %17 = arith.addi %15, %16 : vector<8x8xi32>
      %18 = tpu.iota {dimensions = array<i32: 1>} : vector<8x8xi32>
      %19 = vector.broadcast %14 : i32 to vector<8x8xi32>
      %20 = arith.addi %18, %19 : vector<8x8xi32>
      %21 = arith.subi %17, %20 : vector<8x8xi32>
      %22 = math.absi %21 : vector<8x8xi32>
      %c2_i32_6 = arith.constant 2 : i32
      %23 = vector.broadcast %c2_i32_6 : i32 to vector<8x8xi32>
      %24 = arith.cmpi sle, %22, %23 : vector<8x8xi32>
      %c0 = arith.constant 0 : index
      %c0_7 = arith.constant 0 : index
      %c0_8 = arith.constant 0 : index
      %25 = vector.load %arg3[%c0, %c0_7, %c0_8] : memref<1x8x32xf32, #tpu.memory_space<vmem>>, vector<1x8x32xf32>
      %26 = vector.shape_cast %25 : vector<1x8x32xf32> to vector<8x32xf32>
      %c0_9 = arith.constant 0 : index
      %c0_10 = arith.constant 0 : index
      %c0_11 = arith.constant 0 : index
      %27 = vector.load %arg4[%c0_9, %c0_10, %c0_11] : memref<1x8x32xf32, #tpu.memory_space<vmem>>, vector<1x8x32xf32>
      %28 = vector.shape_cast %27 : vector<1x8x32xf32> to vector<8x32xf32>
      %29 = vector.extract_strided_slice %26 {offsets = [0, 0], sizes = [8, 8], strides = [1, 1]} : vector<8x32xf32> to vector<8x8xf32>
      %30 = vector.extract_strided_slice %28 {offsets = [0, 0], sizes = [8, 8], strides = [1, 1]} : vector<8x32xf32> to vector<8x8xf32>
      %cst = arith.constant dense<0.000000e+00> : vector<8x8xf32>
      %31 = tpu.matmul %29, %30, %cst {dimension_numbers = #tpu.dot_dimension_numbers<[1], [1], [0], [0], [0, 0, 1, 0], [], []>} : vector<8x8xf32>, vector<8x8xf32>, vector<8x8xf32> -> vector<8x8xf32>
      %cst_12 = arith.constant -1.000000e+30 : f32
      %32 = vector.broadcast %cst_12 : f32 to vector<8x8xf32>
      %33 = arith.select %24, %31, %32 : vector<8x8xi1>, vector<8x8xf32>
      %c0_13 = arith.constant 0 : index
      %c0_14 = arith.constant 0 : index
      %c0_15 = arith.constant 0 : index
      %34 = vector.load %arg6[%c0_13, %c0_14, %c0_15] : memref<4x8x1xf32, #tpu.memory_space<vmem>>, vector<1x8x1xf32>
      %35 = vector.shape_cast %34 : vector<1x8x1xf32> to vector<8x1xf32>
      %cst_16 = arith.constant dense<0xFF800000> : vector<8xf32>
      %36 = vector.multi_reduction <maximumf>, %33, %cst_16 [1] : vector<8x8xf32> to vector<8xf32>
      %37 = vector.shape_cast %36 : vector<8xf32> to vector<8x1xf32>
      %38 = arith.maximumf %35, %37 : vector<8x1xf32>
      %39 = arith.subf %35, %38 : vector<8x1xf32>
      %40 = math.exp %39 : vector<8x1xf32>
      %41 = vector.broadcast %38 : vector<8x1xf32> to vector<8x8xf32>
      %42 = arith.subf %33, %41 : vector<8x8xf32>
      %43 = math.exp %42 : vector<8x8xf32>
      %cst_17 = arith.constant 0.000000e+00 : f32
      %44 = vector.broadcast %cst_17 : f32 to vector<8x8xf32>
      %45 = arith.select %24, %43, %44 : vector<8x8xi1>, vector<8x8xf32>
      %c0_18 = arith.constant 0 : index
      %c0_19 = arith.constant 0 : index
      %c0_20 = arith.constant 0 : index
      %46 = vector.load %arg7[%c0_18, %c0_19, %c0_20] : memref<4x8x1xf32, #tpu.memory_space<vmem>>, vector<1x8x1xf32>
      %47 = vector.shape_cast %46 : vector<1x8x1xf32> to vector<8x1xf32>
      %48 = arith.mulf %40, %47 : vector<8x1xf32>
      %cst_21 = arith.constant dense<0.000000e+00> : vector<8xf32>
      %49 = vector.multi_reduction <add>, %45, %cst_21 [1] : vector<8x8xf32> to vector<8xf32>
      %50 = vector.shape_cast %49 : vector<8xf32> to vector<8x1xf32>
      %51 = arith.addf %48, %50 : vector<8x1xf32>
      %c0_22 = arith.constant 0 : index
      %c0_23 = arith.constant 0 : index
      %c0_24 = arith.constant 0 : index
      %52 = vector.load %arg7[%c0_22, %c0_23, %c0_24] : memref<4x8x1xf32, #tpu.memory_space<vmem>>, vector<1x8x1xf32>
      %53 = vector.shape_cast %52 : vector<1x8x1xf32> to vector<8x1xf32>
      %54 = vector.shape_cast %51 : vector<8x1xf32> to vector<1x8x1xf32>
      tpu.vector_store %arg7[%c0_22, %c0_23, %c0_24], %54 {strides = array<i32>} : memref<4x8x1xf32, #tpu.memory_space<vmem>>, vector<1x8x1xf32>,
      %c0_25 = arith.constant 0 : index
      %c0_26 = arith.constant 0 : index
      %c0_27 = arith.constant 0 : index
      %55 = vector.load %arg8[%c0_25, %c0_26, %c0_27] : memref<4x8x8xf32, #tpu.memory_space<vmem>>, vector<1x8x8xf32>
      %56 = vector.shape_cast %55 : vector<1x8x8xf32> to vector<8x8xf32>
      %57 = vector.broadcast %40 : vector<8x1xf32> to vector<8x8xf32>
      %58 = arith.mulf %57, %56 : vector<8x8xf32>
      %cst_28 = arith.constant dense<0.000000e+00> : vector<8x8xf32>
      %59 = tpu.matmul %45, %30, %cst_28 {dimension_numbers = #tpu.dot_dimension_numbers<[1], [0], [0], [1], [0, 0, 1, 1], [], []>} : vector<8x8xf32>, vector<8x8xf32>, vector<8x8xf32> -> vector<8x8xf32>
      %60 = arith.addf %58, %59 : vector<8x8xf32>
      %c0_29 = arith.constant 0 : index
      %c0_30 = arith.constant 0 : index
      %c0_31 = arith.constant 0 : index
      %61 = vector.load %arg8[%c0_29, %c0_30, %c0_31] : memref<4x8x8xf32, #tpu.memory_space<vmem>>, vector<1x8x8xf32>
      %62 = vector.shape_cast %61 : vector<1x8x8xf32> to vector<8x8xf32>
      %63 = vector.shape_cast %60 : vector<8x8xf32> to vector<1x8x8xf32>
      tpu.vector_store %arg8[%c0_29, %c0_30, %c0_31], %63 {strides = array<i32>} : memref<4x8x8xf32, #tpu.memory_space<vmem>>, vector<1x8x8xf32>,
      %c0_32 = arith.constant 0 : index
      %c0_33 = arith.constant 0 : index
      %c0_34 = arith.constant 0 : index
      %64 = vector.load %arg6[%c0_32, %c0_33, %c0_34] : memref<4x8x1xf32, #tpu.memory_space<vmem>>, vector<1x8x1xf32>
      %65 = vector.shape_cast %64 : vector<1x8x1xf32> to vector<8x1xf32>
      %66 = vector.shape_cast %38 : vector<8x1xf32> to vector<1x8x1xf32>
      tpu.vector_store %arg6[%c0_32, %c0_33, %c0_34], %66 {strides = array<i32>} : memref<4x8x1xf32, #tpu.memory_space<vmem>>, vector<1x8x1xf32>,
      %67 = vector.extract_strided_slice %26 {offsets = [0, 8], sizes = [8, 8], strides = [1, 1]} : vector<8x32xf32> to vector<8x8xf32>
      %68 = vector.extract_strided_slice %28 {offsets = [0, 8], sizes = [8, 8], strides = [1, 1]} : vector<8x32xf32> to vector<8x8xf32>
      %cst_35 = arith.constant dense<0.000000e+00> : vector<8x8xf32>
      %69 = tpu.matmul %67, %68, %cst_35 {dimension_numbers = #tpu.dot_dimension_numbers<[1], [1], [0], [0], [0, 0, 1, 0], [], []>} : vector<8x8xf32>, vector<8x8xf32>, vector<8x8xf32> -> vector<8x8xf32>
      %cst_36 = arith.constant -1.000000e+30 : f32
      %70 = vector.broadcast %cst_36 : f32 to vector<8x8xf32>
      %71 = arith.select %24, %69, %70 : vector<8x8xi1>, vector<8x8xf32>
      %c1 = arith.constant 1 : index
      %c0_37 = arith.constant 0 : index
      %c0_38 = arith.constant 0 : index
      %72 = vector.load %arg6[%c1, %c0_37, %c0_38] : memref<4x8x1xf32, #tpu.memory_space<vmem>>, vector<1x8x1xf32>
      %73 = vector.shape_cast %72 : vector<1x8x1xf32> to vector<8x1xf32>
      %cst_39 = arith.constant dense<0xFF800000> : vector<8xf32>
      %74 = vector.multi_reduction <maximumf>, %71, %cst_39 [1] : vector<8x8xf32> to vector<8xf32>
      %75 = vector.shape_cast %74 : vector<8xf32> to vector<8x1xf32>
      %76 = arith.maximumf %73, %75 : vector<8x1xf32>
      %77 = arith.subf %73, %76 : vector<8x1xf32>
      %78 = math.exp %77 : vector<8x1xf32>
      %79 = vector.broadcast %76 : vector<8x1xf32> to vector<8x8xf32>
      %80 = arith.subf %71, %79 : vector<8x8xf32>
      %81 = math.exp %80 : vector<8x8xf32>
      %cst_40 = arith.constant 0.000000e+00 : f32
      %82 = vector.broadcast %cst_40 : f32 to vector<8x8xf32>
      %83 = arith.select %24, %81, %82 : vector<8x8xi1>, vector<8x8xf32>
      %c1_41 = arith.constant 1 : index
      %c0_42 = arith.constant 0 : index
      %c0_43 = arith.constant 0 : index
      %84 = vector.load %arg7[%c1_41, %c0_42, %c0_43] : memref<4x8x1xf32, #tpu.memory_space<vmem>>, vector<1x8x1xf32>
      %85 = vector.shape_cast %84 : vector<1x8x1xf32> to vector<8x1xf32>
      %86 = arith.mulf %78, %85 : vector<8x1xf32>
      %cst_44 = arith.constant dense<0.000000e+00> : vector<8xf32>
      %87 = vector.multi_reduction <add>, %83, %cst_44 [1] : vector<8x8xf32> to vector<8xf32>
      %88 = vector.shape_cast %87 : vector<8xf32> to vector<8x1xf32>
      %89 = arith.addf %86, %88 : vector<8x1xf32>
      %c1_45 = arith.constant 1 : index
      %c0_46 = arith.constant 0 : index
      %c0_47 = arith.constant 0 : index
      %90 = vector.load %arg7[%c1_45, %c0_46, %c0_47] : memref<4x8x1xf32, #tpu.memory_space<vmem>>, vector<1x8x1xf32>
      %91 = vector.shape_cast %90 : vector<1x8x1xf32> to vector<8x1xf32>
      %92 = vector.shape_cast %89 : vector<8x1xf32> to vector<1x8x1xf32>
      tpu.vector_store %arg7[%c1_45, %c0_46, %c0_47], %92 {strides = array<i32>} : memref<4x8x1xf32, #tpu.memory_space<vmem>>, vector<1x8x1xf32>,
      %c1_48 = arith.constant 1 : index
      %c0_49 = arith.constant 0 : index
      %c0_50 = arith.constant 0 : index
      %93 = vector.load %arg8[%c1_48, %c0_49, %c0_50] : memref<4x8x8xf32, #tpu.memory_space<vmem>>, vector<1x8x8xf32>
      %94 = vector.shape_cast %93 : vector<1x8x8xf32> to vector<8x8xf32>
      %95 = vector.broadcast %78 : vector<8x1xf32> to vector<8x8xf32>
      %96 = arith.mulf %95, %94 : vector<8x8xf32>
      %cst_51 = arith.constant dense<0.000000e+00> : vector<8x8xf32>
      %97 = tpu.matmul %83, %68, %cst_51 {dimension_numbers = #tpu.dot_dimension_numbers<[1], [0], [0], [1], [0, 0, 1, 1], [], []>} : vector<8x8xf32>, vector<8x8xf32>, vector<8x8xf32> -> vector<8x8xf32>
      %98 = arith.addf %96, %97 : vector<8x8xf32>
      %c1_52 = arith.constant 1 : index
      %c0_53 = arith.constant 0 : index
      %c0_54 = arith.constant 0 : index
      %99 = vector.load %arg8[%c1_52, %c0_53, %c0_54] : memref<4x8x8xf32, #tpu.memory_space<vmem>>, vector<1x8x8xf32>
      %100 = vector.shape_cast %99 : vector<1x8x8xf32> to vector<8x8xf32>
      %101 = vector.shape_cast %98 : vector<8x8xf32> to vector<1x8x8xf32>
      tpu.vector_store %arg8[%c1_52, %c0_53, %c0_54], %101 {strides = array<i32>} : memref<4x8x8xf32, #tpu.memory_space<vmem>>, vector<1x8x8xf32>,
      %c1_55 = arith.constant 1 : index
      %c0_56 = arith.constant 0 : index
      %c0_57 = arith.constant 0 : index
      %102 = vector.load %arg6[%c1_55, %c0_56, %c0_57] : memref<4x8x1xf32, #tpu.memory_space<vmem>>, vector<1x8x1xf32>
      %103 = vector.shape_cast %102 : vector<1x8x1xf32> to vector<8x1xf32>
      %104 = vector.shape_cast %76 : vector<8x1xf32> to vector<1x8x1xf32>
      tpu.vector_store %arg6[%c1_55, %c0_56, %c0_57], %104 {strides = array<i32>} : memref<4x8x1xf32, #tpu.memory_space<vmem>>, vector<1x8x1xf32>,
      %105 = vector.extract_strided_slice %26 {offsets = [0, 16], sizes = [8, 8], strides = [1, 1]} : vector<8x32xf32> to vector<8x8xf32>
      %106 = vector.extract_strided_slice %28 {offsets = [0, 16], sizes = [8, 8], strides = [1, 1]} : vector<8x32xf32> to vector<8x8xf32>
      %cst_58 = arith.constant dense<0.000000e+00> : vector<8x8xf32>
      %107 = tpu.matmul %105, %106, %cst_58 {dimension_numbers = #tpu.dot_dimension_numbers<[1], [1], [0], [0], [0, 0, 1, 0], [], []>} : vector<8x8xf32>, vector<8x8xf32>, vector<8x8xf32> -> vector<8x8xf32>
      %cst_59 = arith.constant -1.000000e+30 : f32
      %108 = vector.broadcast %cst_59 : f32 to vector<8x8xf32>
      %109 = arith.select %24, %107, %108 : vector<8x8xi1>, vector<8x8xf32>
      %c2 = arith.constant 2 : index
      %c0_60 = arith.constant 0 : index
      %c0_61 = arith.constant 0 : index
      %110 = vector.load %arg6[%c2, %c0_60, %c0_61] : memref<4x8x1xf32, #tpu.memory_space<vmem>>, vector<1x8x1xf32>
      %111 = vector.shape_cast %110 : vector<1x8x1xf32> to vector<8x1xf32>
      %cst_62 = arith.constant dense<0xFF800000> : vector<8xf32>
      %112 = vector.multi_reduction <maximumf>, %109, %cst_62 [1] : vector<8x8xf32> to vector<8xf32>
      %113 = vector.shape_cast %112 : vector<8xf32> to vector<8x1xf32>
      %114 = arith.maximumf %111, %113 : vector<8x1xf32>
      %115 = arith.subf %111, %114 : vector<8x1xf32>
      %116 = math.exp %115 : vector<8x1xf32>
      %117 = vector.broadcast %114 : vector<8x1xf32> to vector<8x8xf32>
      %118 = arith.subf %109, %117 : vector<8x8xf32>
      %119 = math.exp %118 : vector<8x8xf32>
      %cst_63 = arith.constant 0.000000e+00 : f32
      %120 = vector.broadcast %cst_63 : f32 to vector<8x8xf32>
      %121 = arith.select %24, %119, %120 : vector<8x8xi1>, vector<8x8xf32>
      %c2_64 = arith.constant 2 : index
      %c0_65 = arith.constant 0 : index
      %c0_66 = arith.constant 0 : index
      %122 = vector.load %arg7[%c2_64, %c0_65, %c0_66] : memref<4x8x1xf32, #tpu.memory_space<vmem>>, vector<1x8x1xf32>
      %123 = vector.shape_cast %122 : vector<1x8x1xf32> to vector<8x1xf32>
      %124 = arith.mulf %116, %123 : vector<8x1xf32>
      %cst_67 = arith.constant dense<0.000000e+00> : vector<8xf32>
      %125 = vector.multi_reduction <add>, %121, %cst_67 [1] : vector<8x8xf32> to vector<8xf32>
      %126 = vector.shape_cast %125 : vector<8xf32> to vector<8x1xf32>
      %127 = arith.addf %124, %126 : vector<8x1xf32>
      %c2_68 = arith.constant 2 : index
      %c0_69 = arith.constant 0 : index
      %c0_70 = arith.constant 0 : index
      %128 = vector.load %arg7[%c2_68, %c0_69, %c0_70] : memref<4x8x1xf32, #tpu.memory_space<vmem>>, vector<1x8x1xf32>
      %129 = vector.shape_cast %128 : vector<1x8x1xf32> to vector<8x1xf32>
      %130 = vector.shape_cast %127 : vector<8x1xf32> to vector<1x8x1xf32>
      tpu.vector_store %arg7[%c2_68, %c0_69, %c0_70], %130 {strides = array<i32>} : memref<4x8x1xf32, #tpu.memory_space<vmem>>, vector<1x8x1xf32>,
      %c2_71 = arith.constant 2 : index
      %c0_72 = arith.constant 0 : index
      %c0_73 = arith.constant 0 : index
      %131 = vector.load %arg8[%c2_71, %c0_72, %c0_73] : memref<4x8x8xf32, #tpu.memory_space<vmem>>, vector<1x8x8xf32>
      %132 = vector.shape_cast %131 : vector<1x8x8xf32> to vector<8x8xf32>
      %133 = vector.broadcast %116 : vector<8x1xf32> to vector<8x8xf32>
      %134 = arith.mulf %133, %132 : vector<8x8xf32>
      %cst_74 = arith.constant dense<0.000000e+00> : vector<8x8xf32>
      %135 = tpu.matmul %121, %106, %cst_74 {dimension_numbers = #tpu.dot_dimension_numbers<[1], [0], [0], [1], [0, 0, 1, 1], [], []>} : vector<8x8xf32>, vector<8x8xf32>, vector<8x8xf32> -> vector<8x8xf32>
      %136 = arith.addf %134, %135 : vector<8x8xf32>
      %c2_75 = arith.constant 2 : index
      %c0_76 = arith.constant 0 : index
      %c0_77 = arith.constant 0 : index
      %137 = vector.load %arg8[%c2_75, %c0_76, %c0_77] : memref<4x8x8xf32, #tpu.memory_space<vmem>>, vector<1x8x8xf32>
      %138 = vector.shape_cast %137 : vector<1x8x8xf32> to vector<8x8xf32>
      %139 = vector.shape_cast %136 : vector<8x8xf32> to vector<1x8x8xf32>
      tpu.vector_store %arg8[%c2_75, %c0_76, %c0_77], %139 {strides = array<i32>} : memref<4x8x8xf32, #tpu.memory_space<vmem>>, vector<1x8x8xf32>,
      %c2_78 = arith.constant 2 : index
      %c0_79 = arith.constant 0 : index
      %c0_80 = arith.constant 0 : index
      %140 = vector.load %arg6[%c2_78, %c0_79, %c0_80] : memref<4x8x1xf32, #tpu.memory_space<vmem>>, vector<1x8x1xf32>
      %141 = vector.shape_cast %140 : vector<1x8x1xf32> to vector<8x1xf32>
      %142 = vector.shape_cast %114 : vector<8x1xf32> to vector<1x8x1xf32>
      tpu.vector_store %arg6[%c2_78, %c0_79, %c0_80], %142 {strides = array<i32>} : memref<4x8x1xf32, #tpu.memory_space<vmem>>, vector<1x8x1xf32>,
      %143 = vector.extract_strided_slice %26 {offsets = [0, 24], sizes = [8, 8], strides = [1, 1]} : vector<8x32xf32> to vector<8x8xf32>
      %144 = vector.extract_strided_slice %28 {offsets = [0, 24], sizes = [8, 8], strides = [1, 1]} : vector<8x32xf32> to vector<8x8xf32>
      %cst_81 = arith.constant dense<0.000000e+00> : vector<8x8xf32>
      %145 = tpu.matmul %143, %144, %cst_81 {dimension_numbers = #tpu.dot_dimension_numbers<[1], [1], [0], [0], [0, 0, 1, 0], [], []>} : vector<8x8xf32>, vector<8x8xf32>, vector<8x8xf32> -> vector<8x8xf32>
      %cst_82 = arith.constant -1.000000e+30 : f32
      %146 = vector.broadcast %cst_82 : f32 to vector<8x8xf32>
      %147 = arith.select %24, %145, %146 : vector<8x8xi1>, vector<8x8xf32>
      %c3 = arith.constant 3 : index
      %c0_83 = arith.constant 0 : index
      %c0_84 = arith.constant 0 : index
      %148 = vector.load %arg6[%c3, %c0_83, %c0_84] : memref<4x8x1xf32, #tpu.memory_space<vmem>>, vector<1x8x1xf32>
      %149 = vector.shape_cast %148 : vector<1x8x1xf32> to vector<8x1xf32>
      %cst_85 = arith.constant dense<0xFF800000> : vector<8xf32>
      %150 = vector.multi_reduction <maximumf>, %147, %cst_85 [1] : vector<8x8xf32> to vector<8xf32>
      %151 = vector.shape_cast %150 : vector<8xf32> to vector<8x1xf32>
      %152 = arith.maximumf %149, %151 : vector<8x1xf32>
      %153 = arith.subf %149, %152 : vector<8x1xf32>
      %154 = math.exp %153 : vector<8x1xf32>
      %155 = vector.broadcast %152 : vector<8x1xf32> to vector<8x8xf32>
      %156 = arith.subf %147, %155 : vector<8x8xf32>
      %157 = math.exp %156 : vector<8x8xf32>
      %cst_86 = arith.constant 0.000000e+00 : f32
      %158 = vector.broadcast %cst_86 : f32 to vector<8x8xf32>
      %159 = arith.select %24, %157, %158 : vector<8x8xi1>, vector<8x8xf32>
      %c3_87 = arith.constant 3 : index
      %c0_88 = arith.constant 0 : index
      %c0_89 = arith.constant 0 : index
      %160 = vector.load %arg7[%c3_87, %c0_88, %c0_89] : memref<4x8x1xf32, #tpu.memory_space<vmem>>, vector<1x8x1xf32>
      %161 = vector.shape_cast %160 : vector<1x8x1xf32> to vector<8x1xf32>
      %162 = arith.mulf %154, %161 : vector<8x1xf32>
      %cst_90 = arith.constant dense<0.000000e+00> : vector<8xf32>
      %163 = vector.multi_reduction <add>, %159, %cst_90 [1] : vector<8x8xf32> to vector<8xf32>
      %164 = vector.shape_cast %163 : vector<8xf32> to vector<8x1xf32>
      %165 = arith.addf %162, %164 : vector<8x1xf32>
      %c3_91 = arith.constant 3 : index
      %c0_92 = arith.constant 0 : index
      %c0_93 = arith.constant 0 : index
      %166 = vector.load %arg7[%c3_91, %c0_92, %c0_93] : memref<4x8x1xf32, #tpu.memory_space<vmem>>, vector<1x8x1xf32>
      %167 = vector.shape_cast %166 : vector<1x8x1xf32> to vector<8x1xf32>
      %168 = vector.shape_cast %165 : vector<8x1xf32> to vector<1x8x1xf32>
      tpu.vector_store %arg7[%c3_91, %c0_92, %c0_93], %168 {strides = array<i32>} : memref<4x8x1xf32, #tpu.memory_space<vmem>>, vector<1x8x1xf32>,
      %c3_94 = arith.constant 3 : index
      %c0_95 = arith.constant 0 : index
      %c0_96 = arith.constant 0 : index
      %169 = vector.load %arg8[%c3_94, %c0_95, %c0_96] : memref<4x8x8xf32, #tpu.memory_space<vmem>>, vector<1x8x8xf32>
      %170 = vector.shape_cast %169 : vector<1x8x8xf32> to vector<8x8xf32>
      %171 = vector.broadcast %154 : vector<8x1xf32> to vector<8x8xf32>
      %172 = arith.mulf %171, %170 : vector<8x8xf32>
      %cst_97 = arith.constant dense<0.000000e+00> : vector<8x8xf32>
      %173 = tpu.matmul %159, %144, %cst_97 {dimension_numbers = #tpu.dot_dimension_numbers<[1], [0], [0], [1], [0, 0, 1, 1], [], []>} : vector<8x8xf32>, vector<8x8xf32>, vector<8x8xf32> -> vector<8x8xf32>
      %174 = arith.addf %172, %173 : vector<8x8xf32>
      %c3_98 = arith.constant 3 : index
      %c0_99 = arith.constant 0 : index
      %c0_100 = arith.constant 0 : index
      %175 = vector.load %arg8[%c3_98, %c0_99, %c0_100] : memref<4x8x8xf32, #tpu.memory_space<vmem>>, vector<1x8x8xf32>
      %176 = vector.shape_cast %175 : vector<1x8x8xf32> to vector<8x8xf32>
      %177 = vector.shape_cast %174 : vector<8x8xf32> to vector<1x8x8xf32>
      tpu.vector_store %arg8[%c3_98, %c0_99, %c0_100], %177 {strides = array<i32>} : memref<4x8x8xf32, #tpu.memory_space<vmem>>, vector<1x8x8xf32>,
      %c3_101 = arith.constant 3 : index
      %c0_102 = arith.constant 0 : index
      %c0_103 = arith.constant 0 : index
      %178 = vector.load %arg6[%c3_101, %c0_102, %c0_103] : memref<4x8x1xf32, #tpu.memory_space<vmem>>, vector<1x8x1xf32>
      %179 = vector.shape_cast %178 : vector<1x8x1xf32> to vector<8x1xf32>
      %180 = vector.shape_cast %152 : vector<8x1xf32> to vector<1x8x1xf32>
      tpu.vector_store %arg6[%c3_101, %c0_102, %c0_103], %180 {strides = array<i32>} : memref<4x8x1xf32, #tpu.memory_space<vmem>>, vector<1x8x1xf32>,
    } else {
    }
    %c2_i32 = arith.constant 2 : i32
    %10 = arith.cmpi eq, %arg2, %c2_i32 : i32
    %11 = arith.extui %10 : i1 to i32
    %c0_i32_4 = arith.constant 0 : i32
    %12 = arith.cmpi ne, %11, %c0_i32_4 : i32
    scf.if %12 {
      %c0 = arith.constant 0 : index
      %c0_5 = arith.constant 0 : index
      %c0_6 = arith.constant 0 : index
      %13 = vector.load %arg7[%c0, %c0_5, %c0_6] : memref<4x8x1xf32, #tpu.memory_space<vmem>>, vector<1x8x1xf32>
      %14 = vector.shape_cast %13 : vector<1x8x1xf32> to vector<8x1xf32>
      %15 = tpu.reciprocal %14 {approx = true} : vector<8x1xf32> -> vector<8x1xf32>
      %c0_7 = arith.constant 0 : index
      %c0_8 = arith.constant 0 : index
      %c0_9 = arith.constant 0 : index
      %16 = vector.load %arg8[%c0_7, %c0_8, %c0_9] : memref<4x8x8xf32, #tpu.memory_space<vmem>>, vector<1x8x8xf32>
      %17 = vector.shape_cast %16 : vector<1x8x8xf32> to vector<8x8xf32>
      %18 = vector.broadcast %15 : vector<8x1xf32> to vector<8x8xf32>
      %19 = arith.mulf %17, %18 : vector<8x8xf32>
      %c1 = arith.constant 1 : index
      %c0_10 = arith.constant 0 : index
      %c0_11 = arith.constant 0 : index
      %20 = vector.load %arg7[%c1, %c0_10, %c0_11] : memref<4x8x1xf32, #tpu.memory_space<vmem>>, vector<1x8x1xf32>
      %21 = vector.shape_cast %20 : vector<1x8x1xf32> to vector<8x1xf32>
      %22 = tpu.reciprocal %21 {approx = true} : vector<8x1xf32> -> vector<8x1xf32>
      %c1_12 = arith.constant 1 : index
      %c0_13 = arith.constant 0 : index
      %c0_14 = arith.constant 0 : index
      %23 = vector.load %arg8[%c1_12, %c0_13, %c0_14] : memref<4x8x8xf32, #tpu.memory_space<vmem>>, vector<1x8x8xf32>
      %24 = vector.shape_cast %23 : vector<1x8x8xf32> to vector<8x8xf32>
      %25 = vector.broadcast %22 : vector<8x1xf32> to vector<8x8xf32>
      %26 = arith.mulf %24, %25 : vector<8x8xf32>
      %c2 = arith.constant 2 : index
      %c0_15 = arith.constant 0 : index
      %c0_16 = arith.constant 0 : index
      %27 = vector.load %arg7[%c2, %c0_15, %c0_16] : memref<4x8x1xf32, #tpu.memory_space<vmem>>, vector<1x8x1xf32>
      %28 = vector.shape_cast %27 : vector<1x8x1xf32> to vector<8x1xf32>
      %29 = tpu.reciprocal %28 {approx = true} : vector<8x1xf32> -> vector<8x1xf32>
      %c2_17 = arith.constant 2 : index
      %c0_18 = arith.constant 0 : index
      %c0_19 = arith.constant 0 : index
      %30 = vector.load %arg8[%c2_17, %c0_18, %c0_19] : memref<4x8x8xf32, #tpu.memory_space<vmem>>, vector<1x8x8xf32>
      %31 = vector.shape_cast %30 : vector<1x8x8xf32> to vector<8x8xf32>
      %32 = vector.broadcast %29 : vector<8x1xf32> to vector<8x8xf32>
      %33 = arith.mulf %31, %32 : vector<8x8xf32>
      %c3 = arith.constant 3 : index
      %c0_20 = arith.constant 0 : index
      %c0_21 = arith.constant 0 : index
      %34 = vector.load %arg7[%c3, %c0_20, %c0_21] : memref<4x8x1xf32, #tpu.memory_space<vmem>>, vector<1x8x1xf32>
      %35 = vector.shape_cast %34 : vector<1x8x1xf32> to vector<8x1xf32>
      %36 = tpu.reciprocal %35 {approx = true} : vector<8x1xf32> -> vector<8x1xf32>
      %c3_22 = arith.constant 3 : index
      %c0_23 = arith.constant 0 : index
      %c0_24 = arith.constant 0 : index
      %37 = vector.load %arg8[%c3_22, %c0_23, %c0_24] : memref<4x8x8xf32, #tpu.memory_space<vmem>>, vector<1x8x8xf32>
      %38 = vector.shape_cast %37 : vector<1x8x8xf32> to vector<8x8xf32>
      %39 = vector.broadcast %36 : vector<8x1xf32> to vector<8x8xf32>
      %40 = arith.mulf %38, %39 : vector<8x8xf32>
      %41 = tpu.concatenate %19, %26, %33, %40 in 1 : vector<8x8xf32>, vector<8x8xf32>, vector<8x8xf32>, vector<8x8xf32> -> vector<8x32xf32>
      %c0_25 = arith.constant 0 : index
      %c0_26 = arith.constant 0 : index
      %c0_27 = arith.constant 0 : index
      %42 = vector.load %arg5[%c0_25, %c0_26, %c0_27] : memref<1x8x32xf32, #tpu.memory_space<vmem>>, vector<1x8x32xf32>
      %43 = vector.shape_cast %42 : vector<1x8x32xf32> to vector<8x32xf32>
      %44 = vector.shape_cast %41 : vector<8x32xf32> to vector<1x8x32xf32>
      tpu.vector_store %arg5[%c0_25, %c0_26, %c0_27], %44 {strides = array<i32>} : memref<1x8x32xf32, #tpu.memory_space<vmem>>, vector<1x8x32xf32>,
    } else {
    }
    return
  }
  func.func @transform_0(%arg0: i32, %arg1: i32, %arg2: i32) -> (i32, i32, i32) {
    %c0_i32 = arith.constant 0 : i32
    %c0_i32_0 = arith.constant 0 : i32
    return %arg0, %arg1, %c0_i32 : i32, i32, i32
  }
  func.func @transform_1(%arg0: i32, %arg1: i32, %arg2: i32) -> (i32, i32, i32) {
    %c1_i32 = arith.constant 1 : i32
    %0 = arith.subi %arg2, %c1_i32 : i32
    %1 = arith.addi %arg1, %0 : i32
    %c0_i32 = arith.constant 0 : i32
    %c0_i32_0 = arith.constant 0 : i32
    %2 = arith.maxsi %c0_i32, %1 : i32
    %3 = arith.minsi %c0_i32_0, %2 : i32
    %c0_i32_1 = arith.constant 0 : i32
    %c0_i32_2 = arith.constant 0 : i32
    return %arg0, %3, %c0_i32_1 : i32, i32, i32
  }
  func.func @transform_2(%arg0: i32, %arg1: i32, %arg2: i32) -> (i32, i32, i32) {
    %c0_i32 = arith.constant 0 : i32
    %c0_i32_0 = arith.constant 0 : i32
    return %arg0, %arg1, %c0_i32 : i32, i32, i32
  }
}

</mosaic_0001>

<bundles_post_ra>
// kernel: tpu_custom_call.1
= control target key start
LH: loop header
LB: loop body
LE: loop exit
PB: predicated region body
PF: predicated region fallthrough
CT: control target
= control target key end

     0   :  { %7 = vsyncpa [#allocation6], 0  ;;  %s1993_s0 = inlined_call_operand.hbm [shape: f32[2,8,32], index: 0, kind: input, shape index: {}]   ;;  %s1994_s1 = inlined_call_operand.hbm [shape: f32[2,8,32], index: 1, kind: input, shape index: {}]   ;;  %s1995_s2 = inlined_call_operand.hbm [shape: f32[2,8,32], index: 2, kind: output, shape index: {}]  }
   0x1   :  { %9 = vsyncpa [#allocation6 + $0x1], 0 }
   0x2   :  { %10 = vsyncpa [#allocation9], 0 }
   0x3   :  { %12 = vsyncpa [#allocation9 + $0x1], 0 }
   0x4   :  { %13 = vsyncpa [#allocation7], 0 }
   0x5   :  { %15 = vsyncpa [#allocation7 + $0x1], 0  ;;  %s1661_s9 = smov 0   ;;  %s1663_s10 = smov 0  }
   0x6   :  { %s1665_s11 = smov 0   ;;  %s1667_s12 = smov 0  }
   0x7   :  { %s1669_s13 = smov 0   ;;  %s1671_s14 = smov 0  }
   0x8   :  { %s1673_s15 = smov 0   ;;  %s1675_s16 = smov 0  }
   0x9 LB: > { %s1237_s17 = sadd.s32 4294967295, %s1629_s16   ;;  %s1238_s18 = sadd.s32 4294967294, %s1629_s16   ;;  %s1629_s16 = sphi %s1675_s16, %s21_s16   ;;  %s1625_s15 = sphi %s1673_s15, %s2016_s15   ;;  %s1621_s14 = sphi %s1671_s14, %s2015_s14   ;;  %s1617_s13 = sphi %s1669_s13, %s2014_s13   ;;  %s1613_s12 = sphi %s1667_s12, %s2013_s12   ;;  %s1609_s11 = sphi %s1665_s11, %s2012_s11   ;;  %s1605_s10 = sphi %s1663_s10, %s2011_s10   ;;  %s1601_s9 = sphi %s1661_s9, %s2010_s9  }
   0xa   : > { %s33_s19 = sadd.s32 1, %s1621_s14  ;;  %s40_s20 = sadd.s32 1, %s1625_s15 }
   0xb   : > { %p34_p0 = scmp.ge.s32.totalorder %s33_s19, 3  ;;  %s49_s21 = sadd.s32 1, %s1609_s11 }
   0xc   : > { %p56_p1 = scmp.ne.s32.totalorder %s1609_s11, %s1605_s10  ;;  %p57_p2 = scmp.eq.s32.totalorder %s1629_s16, 0 }
   0xd   : > { %s2018_s19 = smov (%p34_p0, %s33_s19), 0  ;;  %s2020_s20 = smov (!%p34_p0, %s40_s20), %s1625_s15 }
   0xe   : > { %p1712_p3 = por %p57_p2, %p56_p1  ;;  %p62_p4 = scmp.ne.s32.totalorder %s1605_s10, %s1601_s9 }
   0xf   : > { %p42_p5 = scmp.ge.s32.totalorder %s2020_s20, 2  ;;  %p63_p6 = scmp.eq.s32.totalorder %s1237_s17, 0 }
  0x10   : > { %p128_p7 = scmp.eq.s32.totalorder %s1237_s17, 5  ;;  %p134_p8 = scmp.eq.s32.totalorder %s1238_s18, 5 }
  0x11   : > { %s2022_s20 = smov (%p42_p5, %s2020_s20), 0  ;;  %p1720_p9 = por %p63_p6, %p62_p4 }
  0x12   : > { %p1724_p10 = por %p128_p7, %p56_p1  ;;  %s44_s25 = ssub.s32 %s1625_s15, %s2022_s20 }
  0x13   : > { %s1999_s23 = scalar_select %p1720_p9, 1, 0 }
  0x14   : > { %s2000_s24 = scalar_select %p1724_p10, 1, 0 }
  0x15   : > { %p1730_p11 = por %p134_p8, %p62_p4  ;;  %p47_p12 = scmp.eq.s32.totalorder %s44_s25, 0 }
  0x16   : > { %p1361_p13 = scmp.lt.s32.totalorder %s1629_s16, 6  ;;  %s1736_s27 = sand.u32 1, %s1609_s11  }
  0x17   : > { %s2001_s26 = scalar_select %p1730_p11, 1, 0 }
  0x18   : > { %s1739_s28 = scalar_select %p47_p12, %s1609_s11, %s49_s21  }
  0x19   : > { %s1253_s29 = sshll.u32 %s1736_s27, 3  ;;  %s1254_s30 = sshll.u32 %s1625_s15, 7 }
  0x1a   : > { %s1748_s5 = scalar_lea.hbm %s1993_s0, %s1254_s30  ;;  %s158_s6 = scalar_lea.vmem [#allocation5], %s1253_s29 }
  0x1b   : > { %s166_s7 = sshll.u32 %s158_s6, 4  ;;  %p1756_p0 = pnand %p1361_p13, %p1712_p3  ;;  %s1752_s7 = int_to_ptr.vmem [resolvable:$true] %s166_s7 }
  0x1c   : > { %s155_s17 = scalar_lea.sflag [#allocation6], %s1736_s27  ;;  %s1467_s18 = scalar_lea.hbm %s1748_s5, 128 }
  0x1d   : > { %p1468_p4 = scmp.ne.s32.totalorder %s1748_s5, %s1467_s18  ;;  %p1469_p5 = pneg %p1756_p0 }
  0x1e   : > { %s1472_s22 = scalar_lea.hbm %s1993_s0, 256  ;;  %p1473_p3 = scmp.lt.u32.totalorder %s1748_s5, %s1993_s0 }
  0x1f   : > { %p1470_p6 = pnand %p1469_p5, %p1468_p4  ;;  %p1474_p8 = scmp.lt.u32.totalorder %s1472_s22, %s1467_s18 }
  0x20   : > { %p1476_p13 = scmp.lt.u32.totalorder %s1467_s18, %s1748_s5 }
  0x21   : > { %p1471_p7 = pneg %p1470_p6  ;;  %p1475_p12 = por %p1474_p8, %p1473_p3 }
  0x23   : > { %p1477_p1 = por %p1476_p13, %p1475_p12 }
  0x25   : > { %p1478_p2 = pnand %p1477_p1, %p1471_p7 }
  0x27   : > { %1481 = shalt.err (!%p1478_p2)
}
  0x28   : > { %s1482_s6 = scalar_lea.vmem %s1752_s7, 128  ;;  %s1631_s21 = smov [#allocation5]  }
  0x29   : > { %p1483_p4 = scmp.ne.s32.totalorder %s1752_s7, %s1482_s6  ;;  %s1487_s25 = sshll.u32 %s1631_s21, 4  ;;  %s1488_s25 = int_to_ptr.vmem [resolvable:$false] %s1487_s25 }
  0x2a   : > { %s1489_s3 = scalar_lea.vmem %s1488_s25, 256  ;;  %p1490_p10 = scmp.lt.s32.totalorder %s1752_s7, %s1488_s25 }
  0x2b   : > { %p1485_p6 = pnand %p1483_p4, %p1469_p5  ;;  %p1491_p3 = scmp.lt.s32.totalorder %s1489_s3, %s1482_s6 }
  0x2d   : > { %p1486_p11 = pneg %p1485_p6  ;;  %p1492_p8 = por %p1491_p3, %p1490_p10 }
  0x2f   : > { %p1493_p12 = pnand %p1492_p8, %p1486_p11 }
  0x31   : > { %1496 = shalt.err (!%p1493_p12)
}
  0x32   : > { %1353 = dma.hbm_to_vmem [thread:$0]  (!%p1756_p0), %s1748_s5, 128, %s1752_s7, %s155_s17  }
  0x33   : > { %p2003_p1 = scmp.lt.s32.totalorder %s1629_s16, 7  ;;  %p2004_p2 = scmp.ge.s32.totalorder %s1629_s16, 1 }
  0x34   : > { %s1801_s6 = scalar_lea.hbm %s1994_s1, %s1254_s30  ;;  %s177_s21 = scalar_lea.vmem [#allocation8], %s1253_s29 }
  0x35   : > { %p1792_p7 = pnand %p2004_p2, %p2003_p1  ;;  %s191_s25 = sshll.u32 %s177_s21, 4  ;;  %s192_s25 = int_to_ptr.vmem [resolvable:$true] %s191_s25 }
  0x36   : > { %s174_s5 = scalar_lea.sflag [#allocation9], %s1736_s27  ;;  %s1497_s7 = scalar_lea.hbm %s1801_s6, 128 }
  0x37   : > { %s2005_s18 = scalar_select %p1792_p7, 1, 0 }
  0x38   : > { %p1498_p10 = scmp.ne.s32.totalorder %s1801_s6, %s1497_s7  ;;  %s1502_s30 = scalar_lea.hbm %s1994_s1, 256 }
  0x39   : > { %p1503_p4 = scmp.lt.u32.totalorder %s1801_s6, %s1994_s1  ;;  %p1504_p6 = scmp.lt.u32.totalorder %s1502_s30, %s1497_s7 }
  0x3a   : > { %p1500_p11 = pnand %p1498_p10, %p1469_p5  ;;  %p1506_p8 = scmp.lt.u32.totalorder %s1497_s7, %s1801_s6 }
  0x3b   : > { %p1505_p3 = por %p1504_p6, %p1503_p4 }
  0x3c   : > { %p1501_p13 = pneg %p1500_p11 }
  0x3d   : > { %p1507_p12 = por %p1506_p8, %p1505_p3 }
  0x3f   : > { %p1508_p1 = pnand %p1507_p12, %p1501_p13 }
  0x41   : > { %1511 = shalt.err (!%p1508_p1)
}
  0x42   : > { %s1512_s27 = scalar_lea.vmem %s192_s25, 128  ;;  %s1632_s29 = smov [#allocation8]  }
  0x43   : > { %p1513_p2 = scmp.ne.s32.totalorder %s192_s25, %s1512_s27  ;;  %s1517_s21 = sshll.u32 %s1632_s29, 4  ;;  %s1518_s21 = int_to_ptr.vmem [resolvable:$false] %s1517_s21 }
  0x44   : > { %s1519_s17 = scalar_lea.vmem %s1518_s21, 256  ;;  %p1520_p9 = scmp.lt.s32.totalorder %s192_s25, %s1518_s21 }
  0x45   : > { %p1515_p10 = pnand %p1513_p2, %p1469_p5  ;;  %p1521_p7 = scmp.lt.s32.totalorder %s1519_s17, %s1512_s27 }
  0x47   : > { %p1516_p11 = pneg %p1515_p10  ;;  %p1522_p4 = por %p1521_p7, %p1520_p9 }
  0x49   : > { %p1523_p6 = pnand %p1522_p4, %p1516_p11 }
  0x4b   : > { %1526 = shalt.err (!%p1523_p6)
}
  0x4c   : > { %1356 = dma.hbm_to_vmem [thread:$0]  (!%p1756_p0), %s1801_s6, 128, %s192_s25, %s174_s5  }
  0x4d   : > { %p2006_p13 = scmp.ne.s32.totalorder %s2005_s18, 0 }
  0x4e   : > { %s1828_s7 = sand.u32 (!%p2006_p13), 1, %s1605_s10   ;;  %p2007_p9 = scmp.ne.s32.totalorder (!%p2006_p13), %s1999_s23, 0 }
  0x4f   : > { %200 = sbr.rel (%p2006_p13) target bundleno = 1628 (0x65c), region = 28  ;;  %s1831_s3 = sshll.u32 (!%p2006_p13), %s1828_s7, 3 }
  0x50   : > { %s203_s30 = scalar_lea.sflag (!%p2006_p13), [#allocation6], %s1828_s7  ;;  %s206_s22 = scalar_lea.vmem (!%p2006_p13), [#allocation5], %s1831_s3 }
  0x56   : > { %1588 = dma.done.wait (%p2007_p9), %s203_s30, 128  }
  0x57   : > { %1590 = vsyncadd (%p2007_p9), %s203_s30, 4294967168  ;;  %s212_s8 = scalar_lea.sflag [#allocation9], %s1828_s7  ;;  %s215_s18 = scalar_lea.vmem [#allocation8], %s1831_s3 }
  0x58   : > { %1592 = dma.done.wait (%p2007_p9), %s212_s8, 128  }
  0x59   : > { %1594 = vsyncadd (%p2007_p9), %s212_s8, 4294967168  ;;  %s240_s6 = scalar_lea.vmem [#allocation10], %s1831_s3  ;;  %p1267_p0 = scmp.ne.s32.totalorder %s1613_s12, 0 }
  0x5a   : > { %vm251_vm0 = vcmask (!%p1267_p0), 7168   ;;  %vm260_vm1 = vcmask (!%p1267_p0), 64512   ;;  %v1633_v0 = vmov (!%p1267_p0), -1e+30   ;;  %v1634_v1 = vmov (!%p1267_p0), 0.0  }
  0x5b   : > { %250 = sbr.rel (%p1267_p0) target bundleno = 98 (0x62), region = 40  ;;  %252 = vst.msk [vmem:[#allocation2] sm:$0xff] (!%p1267_p0), %vm251_vm0, %v1633_v0  ;;  %253 = vst.msk [vmem:[#allocation2 + $0x8] sm:$0xff] (!%p1267_p0), %vm251_vm0, %v1633_v0 }
  0x5c   : > { %254 = vst.msk [vmem:[#allocation2 + $0x10] sm:$0xff] (!%p1267_p0), %vm251_vm0, %v1633_v0  ;;  %255 = vst.msk [vmem:[#allocation2 + $0x18] sm:$0xff] (!%p1267_p0), %vm251_vm0, %v1633_v0 }
  0x5d   : > { %256 = vst.msk [vmem:[#allocation3] sm:$0xff] (!%p1267_p0), %vm251_vm0, %v1634_v1  ;;  %257 = vst.msk [vmem:[#allocation3 + $0x8] sm:$0xff] (!%p1267_p0), %vm251_vm0, %v1634_v1 }
  0x5e   : > { %258 = vst.msk [vmem:[#allocation3 + $0x10] sm:$0xff] (!%p1267_p0), %vm251_vm0, %v1634_v1  ;;  %259 = vst.msk [vmem:[#allocation3 + $0x18] sm:$0xff] (!%p1267_p0), %vm251_vm0, %v1634_v1 }
  0x5f   : > { %261 = vst.msk [vmem:[#allocation4] sm:$0xff] (!%p1267_p0), %vm260_vm1, %v1634_v1  ;;  %262 = vst.msk [vmem:[#allocation4 + $0x8] sm:$0xff] (!%p1267_p0), %vm260_vm1, %v1634_v1 }
  0x60   : > { %263 = vst.msk [vmem:[#allocation4 + $0x10] sm:$0xff] (!%p1267_p0), %vm260_vm1, %v1634_v1  ;;  %264 = vst.msk [vmem:[#allocation4 + $0x18] sm:$0xff] (!%p1267_p0), %vm260_vm1, %v1634_v1 }
  0x62 PF: > { %s1268_s23 = sadd.s32 4294967295, %s1613_s12 }
  0x63   : > { %p267_p5 = scmp.ge.s32.totalorder %s1268_s23, 0  ;;  %p268_p7 = scmp.lt.s32.totalorder %s1268_s23, 1 }
  0x65   : > { %p269_p3 = pnand %p268_p7, %p267_p5 }
  0x66   : > { %v289_v2 = vld [vmem:[%s215_s18] sm:$0xff] (!%p269_p3)  ;;  %vm290_vm2 = vcmask (!%p269_p3), 64512   ;;  %v1635_v3 = vmov (!%p269_p3), 0.0   ;;  %vm1636_vm3 = vmmov (!%p269_p3), 0   ;;  %v288_v4 = vld [vmem:[%s206_s22] sm:$0xff] (!%p269_p3)  ;;  %v275_v5 = vlaneseq (!%p269_p3)  ;;  %s1269_s25 = sshll.u32 (!%p269_p3), %s1268_s23, 3 }
  0x67   : > { %272 = sbr.rel (%p269_p3) target bundleno = 1338 (0x53a), region = 44  ;;  %1304 = vmatprep.subr.mxu0 (!%p269_p3), %v1635_v3  ;;  %1306 = vmatprep.mubr.msk.f32.mxu0 (!%p269_p3), %vm1636_vm3, %v1635_v3  ;;  %v281_v7 = vstv (!%p269_p3), %s1269_s25  ;;  %v1637_v17 = vmov (!%p269_p3), 0   ;;  %s1638_s5 = smov (!%p269_p3), 120   ;;  %v368_v18 = vld [vmem:[#allocation2] sm:$0xff] (!%p269_p3)  ;;  %vm391_vm5 = vcmask (!%p269_p3), 7168   ;;  %v556_v48 = vld [vmem:[#allocation2 + $0x8] sm:$0xff] (!%p269_p3) }
  0x68   : > { %1305 = vmatpush3.xpose.msk.msra.mxu0 (!%p269_p3), %vm290_vm2, %v289_v2  ;;  %1309 = vmatprep.subr.mxu1 (!%p269_p3), %v1635_v3  ;;  %v280_v6 = vand.u32 (!%p269_p3), 127, %v275_v5  ;;  %v276_v8 = vshrl.u32 (!%p269_p3), %v275_v5, 7  ;;  %s1639_s4 = smov (!%p269_p3), 112   ;;  %s1640_s27 = smov (!%p269_p3), 104   ;;  %v746_v51 = vld [vmem:[#allocation2 + $0x10] sm:$0xff] (!%p269_p3)  ;;  %v936_v54 = vld [vmem:[#allocation2 + $0x18] sm:$0xff] (!%p269_p3) }
  0x69   : > { %1319 = vmatprep.subr.mxu0 (!%p269_p3), %v1635_v3  ;;  %1310 = vmatpush3.msra.mxu1 (!%p269_p3), %v289_v2 }
  0x6a   : > { %1311 = vmatprep.mubr.msk.f32.mxu1 (!%p269_p3), %vm1636_vm3, %v1635_v3  ;;  %1314 = vmatprep.subr.mxu1 (!%p269_p3), %v1635_v3  ;;  %v282_v9 = vadd.s32 (!%p269_p3), %v281_v7, %v280_v6 }
  0x6b   : > { %1307 = vmatmul.mubr.msk.f32.vlgmr.msra.gmra.mrb[0].mxu0 (!%p269_p3), %vm290_vm2, %v288_v4  ;;  %1439 = vset.pattern.permute.xlu0 (!%p269_p3), %v1637_v17 }
  0x6c   : > { %1321 = vmatprep.mubr.msk.f32.mxu0 (!%p269_p3), %vm1636_vm3, %v1635_v3  ;;  %v283_v10 = vsub.s32 (!%p269_p3), %v276_v8, %v282_v9  ;;  %1440 = vset.pattern.permute.xlu1 (!%p269_p3), %v1637_v17 }
  0x6d   : > { %478 = vrot.lane.b32.xlu1 (!%p269_p3), %v289_v2, %s1638_s5 }
  0x6e   : > { %v285_v11 = vsub.s32 0, %v283_v10 }
  0x70   : > { %v1862_v12 = vmin.u32 %v285_v11, %v283_v10  ;;  %v393_v10 = vld [vmem:[#allocation4] sm:$0xff] }
  0x71   : > { %476 = vrot.lane.b32.xlu1 %v288_v4, %s1638_s5 }
  0x72   : > { %vm287_vm4 = vcmp.le.s32.totalorder %v1862_v12, 2 }
  0x75   : > { %668 = vrot.lane.b32.xlu1 %v289_v2, %s1639_s4 }
  0x79   : > { %666 = vrot.lane.b32.xlu1 %v288_v4, %s1639_s4 }
  0x7d   : > { %858 = vrot.lane.b32.xlu1 %v289_v2, %s1640_s27 }
  0x81   : > { %856 = vrot.lane.b32.xlu1 %v288_v4, %s1640_s27 }
  0xdf   : > { %v479_v22 = vpop.permute.xlu1 %478 }
  0xe0   : > { %1320 = vmatpush3.msra.mxu0 %v479_v22 }
  0xe1   : > { %1329 = vmatprep.subr.mxu0 %v1635_v3 }
  0xe3   : > { %v477_v25 = vpop.permute.xlu1 %476 }
  0xe7   : > { %v1870_v27 = vpop.permute.xlu1 %668 }
  0xeb   : > { %v667_v28 = vpop.permute.xlu1 %666 }
  0xef   : > { %v1879_v31 = vpop.permute.xlu1 %858 }
  0xf3   : > { %v857_v32 = vpop.permute.xlu1 %856 }
 0x13e   : > { %v363_v13 = vpop.f32.mrb[0].mxu0 }
 0x13f   : > { %v367_v14 = vsel %vm287_vm4, %v363_v13, -1e+30  ;;  %v1308_v15 = vpop.f32.mrb[1].mxu0 }
 0x140   : > { %v369_v16 = vsel %vm290_vm2, %v367_v14, -inf }
 0x141   : > { %370 = vmax.xlane.f32.xlu0 %v369_v16 }
 0x1ce   : > { %v371_v19 = vpop.xlane.xlu0 %370 }
 0x1cf   : > { %v372_v20 = vmax.f32 %v368_v18, %v371_v19 }
 0x1d1   : > { %v373_v21 = vsub.f32 %v368_v18, %v372_v20  ;;  %475 = vst.msk [vmem:[#allocation2] sm:$0xff] %vm391_vm5, %v372_v20  ;;  %378 = vperm.xlu0 %1439, %v372_v20  }
 0x1d3   : > { %v374_v47 = vmul.f32 1.442695, %v373_v21 }
 0x250   : > { %v379_v23 = vpop.permute.xlu0 %378 }
 0x251   : > { %v381_v24 = vsub.f32 %v367_v14, %v379_v23 }
 0x253   : > { %v382_v26 = vmul.f32 1.442695, %v381_v24 }
 0x255   : > { %1441 = vpow2.f32 %v382_v26 }
 0x256   : > { %1443 = vpow2.f32 %v374_v47 }
 0x25f   : > { %v1442_v29 = vpop.eup %1441 }
 0x260   : > { %v384_v30 = vsel %vm287_vm4, %v1442_v29, 0.0  ;;  %v1444_v57 = vpop.eup %1443 }
 0x261   : > { %1312 = vmatmul.mubr.msk.f32.vlgmr.msra.gmra.mrb[0].mxu1 %vm290_vm2, %v384_v30  ;;  %v387_v59 = vsel %vm290_vm2, %v384_v30, 0.0 }
 0x262   : > { %1315 = vmatpush3.xpose.msk.msra.mxu1 %vm290_vm2, %v479_v22  ;;  %1316 = vmatprep.mubr.msk.f32.mxu1 %vm1636_vm3, %v1635_v3 }
 0x263   : > { %1324 = vmatprep.subr.mxu1 %v1635_v3 }
 0x265   : > { %1317 = vmatmul.mubr.msk.f32.vlgmr.msra.gmra.mrb[2].mxu1 %vm290_vm2, %v477_v25 }
 0x266   : > { %1325 = vmatpush3.xpose.msk.msra.mxu1 %vm290_vm2, %v1870_v27  ;;  %1326 = vmatprep.mubr.msk.f32.mxu1 %vm1636_vm3, %v1635_v3 }
 0x267   : > { %1334 = vmatprep.subr.mxu1 %v1635_v3 }
 0x269   : > { %1327 = vmatmul.mubr.msk.f32.vlgmr.msra.gmra.mrb[4].mxu1 %vm290_vm2, %v667_v28  ;;  %v385_v28 = vld [vmem:[#allocation3] sm:$0xff] }
 0x26a   : > { %1335 = vmatpush3.xpose.msk.msra.mxu1 %vm290_vm2, %v1879_v31  ;;  %1336 = vmatprep.mubr.msk.f32.mxu1 %vm1636_vm3, %v1635_v3  ;;  %v386_v29 = vmul.f32 %v1444_v57, %v385_v28 }
 0x26d   : > { %1337 = vmatmul.mubr.msk.f32.vlgmr.msra.gmra.mrb[6].mxu1 %vm290_vm2, %v857_v32 }
 0x334   : > { %v1893_v33 = vpop.f32.mrb[0].mxu1 }
 0x335   : > { %v1313_v34 = vpop.f32.mrb[1].mxu1 }
 0x338   : > { %v550_v35 = vpop.f32.mrb[2].mxu1 }
 0x339   : > { %v554_v36 = vsel %vm287_vm4, %v550_v35, -1e+30  ;;  %v1318_v37 = vpop.f32.mrb[3].mxu1  ;;  %v764_v35 = vld [vmem:[#allocation3 + $0x10] sm:$0xff] }
 0x33a   : > { %v557_v38 = vsel %vm290_vm2, %v554_v36, -inf  ;;  %v954_v37 = vld [vmem:[#allocation3 + $0x18] sm:$0xff] }
 0x33b   : > { %558 = vmax.xlane.f32.xlu1 %v557_v38 }
 0x33c   : > { %v740_v39 = vpop.f32.mrb[4].mxu1 }
 0x33d   : > { %v744_v40 = vsel %vm287_vm4, %v740_v39, -1e+30  ;;  %v1328_v41 = vpop.f32.mrb[5].mxu1 }
 0x33e   : > { %v747_v42 = vsel %vm290_vm2, %v744_v40, -inf }
 0x33f   : > { %748 = vmax.xlane.f32.xlu0 %v747_v42 }
 0x340   : > { %v930_v43 = vpop.f32.mrb[6].mxu1 }
 0x341   : > { %v934_v44 = vsel %vm287_vm4, %v930_v43, -1e+30  ;;  %v1338_v45 = vpop.f32.mrb[7].mxu1  ;;  %v582_v43 = vld [vmem:[#allocation4 + $0x8] sm:$0xff] }
 0x342   : > { %v937_v46 = vsel %vm290_vm2, %v934_v44, -inf }
 0x343   : > { %938 = vmax.xlane.f32.xlu1 %v937_v46  ;;  %v772_v46 = vld [vmem:[#allocation4 + $0x10] sm:$0xff] }
 0x3c8   : > { %v559_v49 = vpop.xlane.xlu1 %558 }
 0x3c9   : > { %v560_v50 = vmax.f32 %v556_v48, %v559_v49 }
 0x3cb   : > { %665 = vst.msk [vmem:[#allocation2 + $0x8] sm:$0xff] %vm391_vm5, %v560_v50  ;;  %566 = vperm.xlu1 %1440, %v560_v50   ;;  %v561_v58 = vsub.f32 %v556_v48, %v560_v50 }
 0x3cc   : > { %v749_v52 = vpop.xlane.xlu0 %748 }
 0x3cd   : > { %v750_v53 = vmax.f32 %v746_v51, %v749_v52  ;;  %v562_v60 = vmul.f32 1.442695, %v561_v58 }
 0x3cf   : > { %855 = vst.msk [vmem:[#allocation2 + $0x10] sm:$0xff] %vm391_vm5, %v750_v53  ;;  %756 = vperm.xlu0 %1439, %v750_v53   ;;  %v751_v61 = vsub.f32 %v746_v51, %v750_v53  ;;  %1445 = vpow2.f32 %v562_v60  ;;  %v962_v51 = vld [vmem:[#allocation4 + $0x18] sm:$0xff] }
 0x3d0   : > { %v939_v55 = vpop.xlane.xlu1 %938 }
 0x3d1   : > { %v940_v56 = vmax.f32 %v936_v54, %v939_v55  ;;  %v752_v62 = vmul.f32 1.442695, %v751_v61 }
 0x3d3   : > { %1045 = vst.msk [vmem:[#allocation2 + $0x18] sm:$0xff] %vm391_vm5, %v940_v56  ;;  %946 = vperm.xlu1 %1440, %v940_v56   ;;  %396 = vperm.xlu0 %1439, %v1444_v57   ;;  %v941_v63 = vsub.f32 %v936_v54, %v940_v56  ;;  %1447 = vpow2.f32 %v752_v62 }
 0x3d5   : > { %v942_v0 = vmul.f32 1.442695, %v941_v63 }
 0x3d7   : > { %1449 = vpow2.f32 %v942_v0 }
 0x3d9   : > { %v1446_v1 = vpop.eup %1445 }
 0x3dd   : > { %v1448_v2 = vpop.eup %1447 }
 0x3e1   : > { %v1450_v4 = vpop.eup %1449 }
 0x3e2   : > { %v955_v39 = vmul.f32 %v1450_v4, %v954_v37 }
 0x3f7   : > { %388 = vadd.xlane.f32.xlu1 %v387_v59 }
 0x408   : > { %585 = vperm.xlu1 %1440, %v1446_v1  }
 0x40c   : > { %775 = vperm.xlu1 %1440, %v1448_v2  }
 0x410   : > { %965 = vperm.xlu1 %1440, %v1450_v4  }
 0x44a   : > { %v567_v5 = vpop.permute.xlu1 %566 }
 0x44b   : > { %v569_v6 = vsub.f32 %v554_v36, %v567_v5 }
 0x44d   : > { %v570_v7 = vmul.f32 1.442695, %v569_v6 }
 0x44e   : > { %v757_v8 = vpop.permute.xlu0 %756 }
 0x44f   : > { %1451 = vpow2.f32 %v570_v7  ;;  %v759_v9 = vsub.f32 %v744_v40, %v757_v8 }
 0x451   : > { %v760_v11 = vmul.f32 1.442695, %v759_v9 }
 0x452   : > { %v947_v13 = vpop.permute.xlu1 %946  ;;  %v397_v14 = vpop.permute.xlu0 %396 }
 0x453   : > { %1453 = vpow2.f32 %v760_v11  ;;  %v949_v15 = vsub.f32 %v934_v44, %v947_v13  ;;  %v399_v16 = vmul.f32 %v397_v14, %v393_v10 }
 0x455   : > { %v950_v17 = vmul.f32 1.442695, %v949_v15  ;;  %v473_v18 = vadd.f32 %v1893_v33, %v399_v16 }
 0x457   : > { %1455 = vpow2.f32 %v950_v17  ;;  %474 = vst.msk [vmem:[#allocation4] sm:$0xff] %vm290_vm2, %v473_v18 }
 0x459   : > { %v1452_v19 = vpop.eup %1451 }
 0x45a   : > { %v572_v20 = vsel %vm287_vm4, %v1452_v19, 0.0 }
 0x45b   : > { %1322 = vmatmul.mubr.msk.f32.vlgmr.msra.gmra.mrb[2].mxu0 %vm290_vm2, %v572_v20  ;;  %v576_v21 = vsel %vm290_vm2, %v572_v20, 0.0 }
 0x45c   : > { %1330 = vmatpush3.msra.mxu0 %v1870_v27  ;;  %577 = vadd.xlane.f32.xlu0 %v576_v21 }
 0x45d   : > { %v1454_v22 = vpop.eup %1453  ;;  %1331 = vmatprep.mubr.msk.f32.mxu0 %vm1636_vm3, %v1635_v3  ;;  %1339 = vmatprep.subr.mxu0 %v1635_v3 }
 0x45e   : > { %v762_v23 = vsel %vm287_vm4, %v1454_v22, 0.0 }
 0x45f   : > { %1332 = vmatmul.mubr.msk.f32.vlgmr.msra.gmra.mrb[4].mxu0 %vm290_vm2, %v762_v23  ;;  %v766_v24 = vsel %vm290_vm2, %v762_v23, 0.0 }
 0x460   : > { %1340 = vmatpush3.msra.mxu0 %v1879_v31  ;;  %767 = vadd.xlane.f32.xlu0 %v766_v24  ;;  %v574_v31 = vld [vmem:[#allocation3 + $0x8] sm:$0xff] }
 0x461   : > { %v1456_v25 = vpop.eup %1455  ;;  %1341 = vmatprep.mubr.msk.f32.mxu0 %vm1636_vm3, %v1635_v3  ;;  %v575_v33 = vmul.f32 %v1446_v1, %v574_v31  ;;  %v765_v3 = vmul.f32 %v1448_v2, %v764_v35 }
 0x462   : > { %v952_v26 = vsel %vm287_vm4, %v1456_v25, 0.0 }
 0x463   : > { %1342 = vmatmul.mubr.msk.f32.vlgmr.msra.gmra.mrb[6].mxu0 %vm290_vm2, %v952_v26  ;;  %v956_v27 = vsel %vm290_vm2, %v952_v26, 0.0 }
 0x464   : > { %957 = vadd.xlane.f32.xlu0 %v956_v27 }
 0x484   : > { %v389_v30 = vpop.xlane.xlu1 %388 }
 0x485   : > { %v390_v32 = vadd.f32 %v389_v30, %v386_v29 }
 0x487   : > { %392 = vst.msk [vmem:[#allocation3] sm:$0xff] %vm391_vm5, %v390_v32 }
 0x488   : > { %v586_v42 = vpop.permute.xlu1 %585 }
 0x489   : > { %v588_v45 = vmul.f32 %v586_v42, %v582_v43 }
 0x48c   : > { %v776_v44 = vpop.permute.xlu1 %775 }
 0x48d   : > { %v778_v50 = vmul.f32 %v776_v44, %v772_v46 }
 0x490   : > { %v966_v52 = vpop.permute.xlu1 %965 }
 0x491   : > { %v968_v56 = vmul.f32 %v966_v52, %v962_v51 }
 0x4e9   : > { %v578_v34 = vpop.xlane.xlu0 %577 }
 0x4ea   : > { %v579_v36 = vadd.f32 %v578_v34, %v575_v33 }
 0x4ec   : > { %580 = vst.msk [vmem:[#allocation3 + $0x8] sm:$0xff] %vm391_vm5, %v579_v36 }
 0x4ed   : > { %v768_v12 = vpop.xlane.xlu0 %767 }
 0x4ee   : > { %v769_v38 = vadd.f32 %v768_v12, %v765_v3 }
 0x4f0   : > { %770 = vst.msk [vmem:[#allocation3 + $0x10] sm:$0xff] %vm391_vm5, %v769_v38 }
 0x4f1   : > { %v958_v40 = vpop.xlane.xlu0 %957 }
 0x4f2   : > { %v959_v41 = vadd.f32 %v958_v40, %v955_v39 }
 0x4f4   : > { %960 = vst.msk [vmem:[#allocation3 + $0x18] sm:$0xff] %vm391_vm5, %v959_v41 }
 0x52e   : > { %v659_v47 = vpop.f32.mrb[2].mxu0 }
 0x52f   : > { %v663_v48 = vadd.f32 %v659_v47, %v588_v45  ;;  %v1323_v49 = vpop.f32.mrb[3].mxu0 }
 0x531   : > { %664 = vst.msk [vmem:[#allocation4 + $0x8] sm:$0xff] %vm290_vm2, %v663_v48 }
 0x532   : > { %v849_v53 = vpop.f32.mrb[4].mxu0 }
 0x533   : > { %v853_v54 = vadd.f32 %v849_v53, %v778_v50  ;;  %v1333_v55 = vpop.f32.mrb[5].mxu0 }
 0x535   : > { %854 = vst.msk [vmem:[#allocation4 + $0x10] sm:$0xff] %vm290_vm2, %v853_v54 }
 0x536   : > { %v1039_v57 = vpop.f32.mrb[6].mxu0 }
 0x537   : > { %v1043_v58 = vadd.f32 %v1039_v57, %v968_v56  ;;  %v1343_v59 = vpop.f32.mrb[7].mxu0 }
 0x539   : > { %1044 = vst.msk [vmem:[#allocation4 + $0x18] sm:$0xff] %vm290_vm2, %v1043_v58 }
 0x53a PF: > { %p1283_p8 = scmp.ne.s32.totalorder %s1613_s12, 2 }
 0x53b   : > { %v1060_v60 = vld [vmem:[#allocation3 + $0x8] sm:$0xff] (!%p1283_p8)  ;;  %v1082_v61 = vld [vmem:[#allocation3 + $0x18] sm:$0xff] (!%p1283_p8)  ;;  %v1071_v62 = vld [vmem:[#allocation3 + $0x10] sm:$0xff] (!%p1283_p8)  ;;  %v1641_v63 = vmov (!%p1283_p8), 0   ;;  %s1642_s12 = smov (!%p1283_p8), 8   ;;  %s1643_s29 = smov (!%p1283_p8), 16  }
 0x53c   : > { %1049 = sbr.rel (%p1283_p8) target bundleno = 1603 (0x643), region = 48  ;;  %1457 = vset.pattern.permute.xlu0 (!%p1283_p8), %v1641_v63  ;;  %1458 = vset.pattern.permute.xlu1 (!%p1283_p8), %v1641_v63  ;;  %1459 = vrcp.f32 (!%p1283_p8), %v1060_v60  ;;  %v1050_v0 = vld [vmem:[#allocation3] sm:$0xff] (!%p1283_p8)  ;;  %v1063_v6 = vld [vmem:[#allocation4 + $0x8] sm:$0xff] (!%p1283_p8)  ;;  %v1074_v11 = vld [vmem:[#allocation4 + $0x10] sm:$0xff] (!%p1283_p8)  ;;  %s1644_s21 = smov (!%p1283_p8), 24   ;;  %vm1104_vm6 = vcmask (!%p1283_p8), 64512  }
 0x53d   : > { %1461 = vrcp.f32 (!%p1283_p8), %v1082_v61  ;;  %v1052_v16 = vld [vmem:[#allocation4] sm:$0xff] (!%p1283_p8)  ;;  %vm1106_vm7 = vcmask (!%p1283_p8), 130048   ;;  %vm1108_vm8 = vcmask (!%p1283_p8), 195584   ;;  %vm1110_vm9 = vcmask (!%p1283_p8), 261120  }
 0x53e   : > { %1463 = vrcp.f32 (!%p1283_p8), %v1071_v62 }
 0x53f   : > { %1465 = vrcp.f32 (!%p1283_p8), %v1050_v0 }
 0x540   : > { %v1085_v8 = vld [vmem:[#allocation4 + $0x18] sm:$0xff] (!%p1283_p8) }
 0x546   : > { %v1460_v1 = vpop.eup %1459 }
 0x547   : > { %v1462_v2 = vpop.eup %1461  ;;  %1066 = vperm.xlu0 %1457, %v1460_v1  }
 0x548   : > { %v1464_v4 = vpop.eup %1463  ;;  %1088 = vperm.xlu1 %1458, %v1462_v2  }
 0x549   : > { %v1466_v5 = vpop.eup %1465 }
 0x54b   : > { %1077 = vperm.xlu0 %1457, %v1464_v4  }
 0x54c   : > { %1055 = vperm.xlu1 %1458, %v1466_v5  }
 0x5c6   : > { %v1067_v7 = vpop.permute.xlu0 %1066 }
 0x5c7   : > { %v1069_v9 = vmul.f32 %v1067_v7, %v1063_v6  ;;  %v1089_v10 = vpop.permute.xlu1 %1088 }
 0x5c8   : > { %v1091_v13 = vmul.f32 %v1089_v10, %v1085_v8 }
 0x5c9   : > { %1093 = vrot.lane.b32.xlu0 %v1069_v9, %s1642_s12 }
 0x5ca   : > { %v1078_v14 = vpop.permute.xlu0 %1077 }
 0x5cb   : > { %v1080_v15 = vmul.f32 %v1078_v14, %v1074_v11  ;;  %v1056_v17 = vpop.permute.xlu1 %1055 }
 0x5cc   : > { %v1058_v19 = vmul.f32 %v1056_v17, %v1052_v16 }
 0x5cd   : > { %1097 = vrot.lane.b32.xlu1 %v1080_v15, %s1643_s29  ;;  %1101 = vrot.lane.b32.xlu0 %v1091_v13, %s1644_s21 }
 0x63b   : > { %v1094_v18 = vpop.permute.xlu0 %1093 }
 0x63c   : > { %v1105_v20 = vsel %vm1104_vm6, %v1058_v19, %v1094_v18 }
 0x63f   : > { %v1098_v21 = vpop.permute.xlu1 %1097  ;;  %v1102_v22 = vpop.permute.xlu0 %1101 }
 0x640   : > { %v1107_v23 = vsel %vm1106_vm7, %v1105_v20, %v1098_v21 }
 0x641   : > { %v1109_v24 = vsel %vm1108_vm8, %v1107_v23, %v1102_v22 }
 0x642   : > { %1111 = vst.msk [vmem:[%s240_s6] sm:$0xff] %vm1110_vm9, %v1109_v24 }
 0x643 PF: > { %s1285_s17 = sshll.u32 %s1617_s13, 7  ;;  %s1127_s18 = sshll.u32 %s240_s6, 4  ;;  %s1128_s18 = int_to_ptr.vmem [resolvable:$true] %s1127_s18 }
 0x644   : > { %s1943_s8 = scalar_lea.hbm %s1995_s2, %s1285_s17  ;;  %s1113_s23 = scalar_lea.sflag [#allocation7], %s1828_s7 }
 0x645   : > { %s1527_s25 = scalar_lea.vmem %s1128_s18, 128  ;;  %p2008_p1 = scmp.ne.s32.totalorder %s2000_s24, 0 }
 0x646   : > { %p1528_p12 = scmp.ne.s32.totalorder %s1128_s18, %s1527_s25  ;;  %s1645_s5 = smov [#allocation10]  }
 0x647   : > { %s1531_s4 = sshll.u32 %s1645_s5, 4  ;;  %s1532_s4 = int_to_ptr.vmem [resolvable:$false] %s1531_s4 }
 0x648   : > { %p1529_p2 = pnand %p1528_p12, %p2008_p1  ;;  %s1533_s27 = scalar_lea.vmem %s1532_s4, 256 }
 0x649   : > { %p1534_p11 = scmp.lt.s32.totalorder %s1128_s18, %s1532_s4  ;;  %p1535_p4 = scmp.lt.s32.totalorder %s1533_s27, %s1527_s25 }
 0x64a   : > { %p1530_p10 = pneg %p1529_p2 }
 0x64b   : > { %p1536_p6 = por %p1535_p4, %p1534_p11 }
 0x64d   : > { %p1537_p13 = pnand %p1536_p6, %p1530_p10 }
 0x64f   : > { %1540 = shalt.err (!%p1537_p13)
}
 0x650   : > { %s1541_s13 = scalar_lea.hbm %s1943_s8, 128  ;;  %s1545_s6 = scalar_lea.hbm %s1995_s2, 256 }
 0x651   : > { %p1542_p9 = scmp.ne.s32.totalorder %s1943_s8, %s1541_s13  ;;  %p1546_p7 = scmp.lt.u32.totalorder %s1943_s8, %s1995_s2 }
 0x652   : > { %p1547_p3 = scmp.lt.u32.totalorder %s1545_s6, %s1541_s13  ;;  %p1549_p12 = scmp.lt.u32.totalorder %s1541_s13, %s1943_s8 }
 0x653   : > { %p1543_p0 = pnand %p1542_p9, %p2008_p1 }
 0x654   : > { %p1548_p8 = por %p1547_p3, %p1546_p7 }
 0x655   : > { %p1544_p5 = pneg %p1543_p0 }
 0x656   : > { %p1550_p2 = por %p1549_p12, %p1548_p8 }
 0x658   : > { %p1551_p10 = pnand %p1550_p2, %p1544_p5 }
 0x65a   : > { %1554 = shalt.err (!%p1551_p10)
}
 0x65b   : > { %1348 = dma.vmem_to_hbm [thread:$0]  (%p2008_p1), %s1128_s18, 128, %s1943_s8, %s1113_s23  }
 0x65c PF: > { %p1362_p11 = scmp.ge.s32.totalorder %s1629_s16, 2  ;;  %s1139_s21 = sand.u32 1, %s1601_s9  }
 0x65d   : > { %p2009_p4 = scmp.ne.s32.totalorder %s2001_s26, 0  ;;  %s1140_s17 = scalar_lea.sflag [#allocation7], %s1139_s21 }
 0x65f   : > { %p1358_p6 = pnand %p1362_p11, %p2009_p4 }
 0x661   : > { %1596 = dma.done.wait (!%p1358_p6), %s1140_s17, 128  }
 0x662   : > { %1598 = vsyncadd (!%p1358_p6), %s1140_s17, 4294967168  ;;  %s21_s16 = sadd.s32 1, %s1629_s16   ;;  %s2010_s9 = smov %s1605_s10 }
 0x663   : > { %p18_p13 = scmp.ge.s32.totalorder %s21_s16, 8   ;;  %s2011_s10 = smov %s1609_s11 }
 0x664   : > { %s2012_s11 = smov %s1739_s28  ;;  %s2013_s12 = smov %s1621_s14 }
 0x665   : > { %s2014_s13 = smov %s1625_s15  ;;  %s2015_s14 = smov %s2018_s19 }
 0x666   : > { %s2016_s15 = smov %s2022_s20  ;;  %20 = sbr.rel (!%p18_p13) target bundleno = 9 (0x9), region = 113 }
 0x66d   :  { %1145 = vsyncpa [#allocation6], 1 }
 0x66e   :  { %1147 = vsyncpa [#allocation6 + $0x1], 1 }
 0x66f   :  { %1148 = vsyncpa [#allocation9], 1 }
 0x670   :  { %1150 = vsyncpa [#allocation9 + $0x1], 1 }
 0x671   :  { %1151 = vsyncpa [#allocation7], 1 }
 0x672   :  { %1153 = vsyncpa [#allocation7 + $0x1], 1 }

</bundles_post_ra>
